<compile_context>
chip_gen: v7x
topology: tpu7x:2x2x1
jax: 0.10.0
libtpu: 0.0.40
codegen_flags: <defaults>
</compile_context>

<pallas_src>
import jax
import jax.numpy as jnp
from jax.experimental import pallas as pl
from jax.experimental.pallas import tpu as pltpu


def _round_up(x, m):
    return ((x + m - 1) // m) * m


def _cdiv(a, b):
    return (a + b - 1) // b


# ---------------------------------------------------------------------------
# Projection kernel:  out[b, r, :] = x[b, r, :] @ W + bias   (bf16 MXU, f32 acc)
# Used to precompute ep = h_enc @ W1_enc + b1  -> (B, T, H) f32
#                    dp = h_dec @ W1_dec       -> (B, U, H) f32
# ---------------------------------------------------------------------------
def _proj_kernel(x_ref, w_ref, b_ref, o_ref):
    # x_ref: (1, tR, F)   w_ref: (F, H) bf16   b_ref: (1, H) f32   o_ref: (1, tR, H)
    x = x_ref[0].astype(jnp.bfloat16)
    o_ref[0] = (jnp.dot(x, w_ref[...], preferred_element_type=jnp.float32)
                + b_ref[...]).astype(o_ref.dtype)


def _project(x, w_bf16, b_f32, *, row_tile=256):
    B, R, F = x.shape
    H = w_bf16.shape[1]
    tR = min(row_tile, _round_up(R, 8))            # sublane-aligned row tile
    return pl.pallas_call(
        _proj_kernel,
        out_shape=jax.ShapeDtypeStruct((B, R, H), jnp.float32),
        grid_spec=pltpu.PrefetchScalarGridSpec(
            num_scalar_prefetch=0,
            grid=(B, _cdiv(R, tR)),
            in_specs=[
                pl.BlockSpec((1, tR, F), lambda b, r: (b, r, 0)),
                pl.BlockSpec((F, H), lambda b, r: (0, 0)),
                pl.BlockSpec((1, H), lambda b, r: (0, 0)),
            ],
            out_specs=pl.BlockSpec((1, tR, H), lambda b, r: (b, r, 0)),
        ),
        compiler_params=pltpu.CompilerParams(
            dimension_semantics=("parallel", "parallel")),
    )(x, w_bf16, b_f32.reshape(1, H))


# ---------------------------------------------------------------------------
# Joint kernel: for one (batch, T-tile, U-tile, V-tile)
#   h   = tanh(ep_tile[:, None, :] + dp_tile[None, :, :])   (cached over V, bf16)
#   out = h @ W2_tile + b2_tile
# ---------------------------------------------------------------------------
def _joint_kernel(ep_ref, dp_ref, w2_ref, b2_ref, out_ref, h_ref):
    # ep_ref: (1, tT, H) f32   dp_ref: (1, tU, H) f32
    # w2_ref: (H, tV) bf16     b2_ref: (1, tV) f32
    # out_ref: (1, tT, tU, tV) out dtype    h_ref: VMEM scratch (tT*tU, H) bf16
    tT = ep_ref.shape[1]
    tU = dp_ref.shape[1]

    # Hidden tile is computed once per (b, T-tile, U-tile) and reused across
    # all V tiles (V is the innermost "arbitrary" grid axis).  tanh/add in f32,
    # stored bf16 so the second matmul runs at full MXU rate.
    @pl.when(pl.program_id(3) == 0)
    def _():
        ep = ep_ref[0]                                   # (tT, H) f32
        dp = dp_ref[0]                                   # (tU, H) f32
        h = jnp.tanh(ep[:, None, :] + dp[None, :, :])    # (tT, tU, H) f32
        h_ref[...] = h.reshape(tT * tU, h.shape[-1]).astype(h_ref.dtype)

    # Second linear as a canonical 2-D MXU matmul with a large M dimension.
    out = jnp.dot(h_ref[...], w2_ref[...],
                  preferred_element_type=jnp.float32)    # (tT*tU, tV) f32
    out = out + b2_ref[...]
    out_ref[0] = out.reshape(tT, tU, out.shape[-1]).astype(out_ref.dtype)


def joint_forward(h_enc, h_dec, w1e, w1d, b1, w2, b2,
                  *, t_tile=128, u_tile=16, v_tile=512):
    B, T, E = h_enc.shape
    _, U, D = h_dec.shape
    H = w1e.shape[1]
    V = w2.shape[1]
    out_dtype = h_enc.dtype
    out_bytes = jnp.dtype(out_dtype).itemsize

    # Weights cast to bf16 once (full-rate MXU, half the streamed-weight DMA);
    # biases stay f32 and are added after the f32 accumulation.
    w1e_bf = w1e.astype(jnp.bfloat16)
    w1d_bf = w1d.astype(jnp.bfloat16)
    w2_bf = w2.astype(jnp.bfloat16)
    b1_f32 = b1.astype(jnp.float32)
    b2_f32 = b2.astype(jnp.float32)

    # Hoisted first-Linear projections (bias folded into the enc side).
    # Kept in f32 so the tanh argument stays full precision; ep/dp HBM traffic
    # is minor next to the (B,T,U,V) output.
    ep = _project(h_enc, w1e_bf, b1_f32)                         # (B, T, H) f32
    dp = _project(h_dec, w1d_bf, jnp.zeros((H,), jnp.float32))   # (B, U, H) f32

    # Tile picks: sublane/lane aligned even in the "small dim" fallback so the
    # reshapes around the MXU matmul are layout-free.
    tT = min(t_tile, _round_up(T, 8))
    tU = min(u_tile, _round_up(U, 8))
    tV = min(v_tile, _round_up(V, 128))

    # v7x has 2 TensorCores: make sure the parallel grid has >= 2 tiles.
    while B * _cdiv(T, tT) * _cdiv(U, tU) < 2 and tT > 8:
        tT = _round_up(tT // 2, 8)

    # Per-step VMEM footprint (double-buffered streams + resident scratch).
    # Keep under ~40 MiB so the same tiling also fits v7x's 64 MiB VMEM.
    def _footprint(tt, tu, tv):
        return (tt * tu * H * 2                  # bf16 hidden scratch
                + 2 * tt * tu * tv * out_bytes   # double-buffered output tile
                + 2 * H * tv * 2                 # double-buffered bf16 W2 tile
                + 2 * (tt + tu) * H * 4          # double-buffered ep / dp (f32)
                + 2 * tv * 4)                    # b2 tile
    _BUDGET = 40 * 1024 * 1024
    while _footprint(tT, tU, tV) > _BUDGET and tT > 8:
        tT = _round_up(tT // 2, 8)
    while _footprint(tT, tU, tV) > _BUDGET and tU > 8:
        tU = _round_up(tU // 2, 8)

    grid = (B, _cdiv(T, tT), _cdiv(U, tU), _cdiv(V, tV))

    return pl.pallas_call(
        _joint_kernel,
        out_shape=jax.ShapeDtypeStruct((B, T, U, V), out_dtype),
        grid_spec=pltpu.PrefetchScalarGridSpec(
            num_scalar_prefetch=0,
            grid=grid,
            in_specs=[
                pl.BlockSpec((1, tT, H), lambda b, ti, ui, vi: (b, ti, 0)),
                pl.BlockSpec((1, tU, H), lambda b, ti, ui, vi: (b, ui, 0)),
                pl.BlockSpec((H, tV), lambda b, ti, ui, vi: (0, vi)),
                pl.BlockSpec((1, tV), lambda b, ti, ui, vi: (0, vi)),
            ],
            out_specs=pl.BlockSpec((1, tT, tU, tV),
                                   lambda b, ti, ui, vi: (b, ti, ui, vi)),
            scratch_shapes=[pltpu.VMEM((tT * tU, H), jnp.bfloat16)],
        ),
        compiler_params=pltpu.CompilerParams(
            dimension_semantics=("parallel", "parallel", "parallel",
                                 "arbitrary"),
            vmem_limit_bytes=48 * 1024 * 1024),
    )(ep, dp, w2_bf, b2_f32.reshape(1, V))


def joint_reference(h_enc, h_dec, w1e, w1d, b1, w2, b2):
    # Pure-JAX reference mirroring the PyTorch forward (concat path), f32.
    B, T, E = h_enc.shape
    _, U, D = h_dec.shape
    enc = jnp.broadcast_to(h_enc[:, :, None, :], (B, T, U, E))
    dec = jnp.broadcast_to(h_dec[:, None, :, :], (B, T, U, D))
    h = jnp.concatenate([enc, dec], axis=-1)                   # (B,T,U,E+D)
    w1 = jnp.concatenate([w1e, w1d], axis=0)                   # (E+D, H)
    h = jnp.tanh(h @ w1 + b1)
    return h @ w2 + b2


if __name__ == "__main__":
    # Small shapes consistent with the module: enc_dim + dec_dim = input_size.
    B, T, U = 2, 8, 8
    enc_dim, dec_dim = 16, 16          # input_size = 32
    hidden_size = 32
    vocab_size = 128

    key = jax.random.PRNGKey(0)
    k_enc, k_dec, k_w1e, k_w1d, k_b1, k_w2, k_b2 = jax.random.split(key, 7)

    h_enc = jax.random.normal(k_enc, (B, T, enc_dim), dtype=jnp.float32)
    h_dec = jax.random.normal(k_dec, (B, U, dec_dim), dtype=jnp.float32)

    # Deterministic synthetic parameters (shapes from nn.Linear in the module).
    s1 = 1.0 / jnp.sqrt(enc_dim + dec_dim)
    s2 = 1.0 / jnp.sqrt(hidden_size)
    w1e = jax.random.uniform(k_w1e, (enc_dim, hidden_size), minval=-s1, maxval=s1)
    w1d = jax.random.uniform(k_w1d, (dec_dim, hidden_size), minval=-s1, maxval=s1)
    b1 = jax.random.uniform(k_b1, (hidden_size,), minval=-s1, maxval=s1)
    w2 = jax.random.uniform(k_w2, (hidden_size, vocab_size), minval=-s2, maxval=s2)
    b2 = jax.random.uniform(k_b2, (vocab_size,), minval=-s2, maxval=s2)

    out = joint_forward(h_enc, h_dec, w1e, w1d, b1, w2, b2)
    out = jax.block_until_ready(out)

    ref = joint_reference(h_enc, h_dec, w1e, w1d, b1, w2, b2)
    assert out.shape == (B, T, U, vocab_size)
    # bf16 weights / bf16 hidden-tile matmul -> tolerance loosened vs f32 ref.
    assert jnp.allclose(out, ref, atol=5e-2, rtol=5e-2), (
        float(jnp.max(jnp.abs(out - ref))))

    print("KERNEL_OK")
</pallas_src>

<mosaic_0001>
module attributes {stable_mosaic.version = 11 : i64} {
  func.func @_proj_kernel(%arg0: i32, %arg1: i32, %arg2: memref<1x8x16xf32, #tpu.memory_space<vmem>>, %arg3: memref<16x32xbf16, #tpu.memory_space<vmem>>, %arg4: memref<1x32xf32, #tpu.memory_space<vmem>>, %arg5: memref<1x8x32xf32, #tpu.memory_space<vmem>>) attributes {dimension_semantics = [#tpu.dimension_semantics<parallel>, #tpu.dimension_semantics<parallel>], iteration_bounds = array<i64: 2, 1>, scalar_prefetch = 0 : i64, scratch_operands = 0 : i64, tpu.core_type = #tpu.core_type<tc>, window_params = [{transform_indices = @transform_0, window_bounds = array<i64: 1, 8, 16>}, {pipeline_mode = #tpu.pipeline_mode<synchronous>, transform_indices = @transform_1, window_bounds = array<i64: 16, 32>}, {pipeline_mode = #tpu.pipeline_mode<synchronous>, transform_indices = @transform_2, window_bounds = array<i64: 1, 32>}, {transform_indices = @transform_3, window_bounds = array<i64: 1, 8, 32>}]} {
    %c0 = arith.constant 0 : index
    %c0_0 = arith.constant 0 : index
    %c0_1 = arith.constant 0 : index
    %0 = vector.load %arg2[%c0, %c0_0, %c0_1] : memref<1x8x16xf32, #tpu.memory_space<vmem>>, vector<1x8x16xf32>
    %1 = vector.shape_cast %0 : vector<1x8x16xf32> to vector<8x16xf32>
    %2 = arith.truncf %1 : vector<8x16xf32> to vector<8x16xbf16>
    %c0_2 = arith.constant 0 : index
    %c0_3 = arith.constant 0 : index
    %3 = vector.load %arg3[%c0_2, %c0_3] : memref<16x32xbf16, #tpu.memory_space<vmem>>, vector<16x32xbf16>
    %cst = arith.constant dense<0.000000e+00> : vector<8x32xf32>
    %4 = tpu.matmul %2, %3, %cst {dimension_numbers = #tpu.dot_dimension_numbers<[1], [0], [0], [1], [0, 0, 1, 1], [], []>} : vector<8x16xbf16>, vector<16x32xbf16>, vector<8x32xf32> -> vector<8x32xf32>
    %c0_4 = arith.constant 0 : index
    %c0_5 = arith.constant 0 : index
    %5 = vector.load %arg4[%c0_4, %c0_5] : memref<1x32xf32, #tpu.memory_space<vmem>>, vector<1x32xf32>
    %6 = vector.broadcast %5 : vector<1x32xf32> to vector<8x32xf32>
    %7 = arith.addf %4, %6 : vector<8x32xf32>
    %c0_6 = arith.constant 0 : index
    %c0_7 = arith.constant 0 : index
    %c0_8 = arith.constant 0 : index
    %8 = vector.load %arg5[%c0_6, %c0_7, %c0_8] : memref<1x8x32xf32, #tpu.memory_space<vmem>>, vector<1x8x32xf32>
    %9 = vector.shape_cast %8 : vector<1x8x32xf32> to vector<8x32xf32>
    %10 = vector.shape_cast %7 : vector<8x32xf32> to vector<1x8x32xf32>
    tpu.vector_store %arg5[%c0_6, %c0_7, %c0_8], %10 {strides = array<i32>} : memref<1x8x32xf32, #tpu.memory_space<vmem>>, vector<1x8x32xf32>,
    return
  }
  func.func @transform_0(%arg0: i32, %arg1: i32) -> (i32, i32, i32) {
    %c0_i32 = arith.constant 0 : i32
    %c0_i32_0 = arith.constant 0 : i32
    return %arg0, %arg1, %c0_i32 : i32, i32, i32
  }
  func.func @transform_1(%arg0: i32, %arg1: i32) -> (i32, i32) {
    %c0_i32 = arith.constant 0 : i32
    %c0_i32_0 = arith.constant 0 : i32
    %c0_i32_1 = arith.constant 0 : i32
    return %c0_i32, %c0_i32_0 : i32, i32
  }
  func.func @transform_2(%arg0: i32, %arg1: i32) -> (i32, i32) {
    %c0_i32 = arith.constant 0 : i32
    %c0_i32_0 = arith.constant 0 : i32
    %c0_i32_1 = arith.constant 0 : i32
    return %c0_i32, %c0_i32_0 : i32, i32
  }
  func.func @transform_3(%arg0: i32, %arg1: i32) -> (i32, i32, i32) {
    %c0_i32 = arith.constant 0 : i32
    %c0_i32_0 = arith.constant 0 : i32
    return %arg0, %arg1, %c0_i32 : i32, i32, i32
  }
}

</mosaic_0001>

<bundles_post_ra>
// kernel: tpu_custom_call.1
= control target key start
LH: loop header
LB: loop body
LE: loop exit
PB: predicated region body
PF: predicated region fallthrough
CT: control target
= control target key end

     0   :  { %8 = vsyncpa [#allocation3], 0  ;;  %s881_s0 = inlined_call_operand.hbm [shape: f32[2,8,16], index: 0, kind: input, shape index: {}]   ;;  %s882_s1 = inlined_call_operand.hbm [shape: bf16[16,32], index: 1, kind: input, shape index: {}]   ;;  %s883_s2 = inlined_call_operand.vmem [shape: f32[1,32], index: 2, kind: input, shape index: {}]   ;;  %s884_s3 = inlined_call_operand.hbm [shape: f32[2,8,32], index: 3, kind: output, shape index: {}]  }
   0x1   :  { %10 = vsyncpa [#allocation3 + $0x1], 0 }
   0x2   :  { %11 = vsyncpa [#allocation6], 0 }
   0x3   :  { %12 = vsyncpa [#allocation4], 0 }
   0x4   :  { %14 = vsyncpa [#allocation4 + $0x1], 0  ;;  %s664_s12 = smov 0   ;;  %s666_s13 = smov 0  }
   0x5   :  { %s668_s14 = smov 0   ;;  %s670_s15 = smov 0  }
   0x6   :  { %s672_s16 = smov 0   ;;  %s674_s17 = smov 0  }
   0x7 LB: > { %s387_s18 = sadd.s32 4294967295, %s635_s17   ;;  %s388_s19 = sadd.s32 4294967294, %s635_s17   ;;  %s635_s17 = sphi %s674_s17, %s20_s17   ;;  %s631_s16 = sphi %s672_s16, %s908_s16   ;;  %s627_s15 = sphi %s670_s15, %s907_s15   ;;  %s623_s14 = sphi %s668_s14, %s906_s14   ;;  %s619_s13 = sphi %s666_s13, %s905_s13   ;;  %s615_s12 = sphi %s664_s12, %s904_s12  }
   0x8   : > { %p54_p0 = scmp.ne.s32.totalorder %s619_s13, %s615_s12  ;;  %p698_p1 = scmp.eq.s32.totalorder %s387_s18, 0 }
   0x9   : > { %p702_p2 = scmp.eq.s32.totalorder %s387_s18, 1  ;;  %p128_p3 = scmp.eq.s32.totalorder %s388_s19, 1 }
   0xa   : > { %s889_s20 = scalar_select %p698_p1, 1, 0 }
   0xb   : > { %s890_s21 = scalar_select %p702_p2, 1, 0 }
   0xc   : > { %p708_p4 = por %p698_p1, %p54_p0  ;;  %p389_p5 = scmp.ge.s32.totalorder %s635_s17, 1 }
   0xd   : > { %p713_p6 = por %p128_p3, %p54_p0  ;;  %p135_p7 = scmp.lt.s32.totalorder %s635_s17, 3 }
   0xe   : > { %s891_s22 = scalar_select %p708_p4, 1, 0 }
   0xf   : > { %s892_s23 = scalar_select %p713_p6, 1, 0 }
  0x10   : > { %p718_p8 = pnand %p389_p5, %p135_p7  ;;  %s637_s25 = smov [#allocation5]  }
  0x11   : > { %s147_s26 = sshll.u32 %s637_s25, 4  ;;  %s32_s28 = sadd.s32 1, %s631_s16  ;;  %s148_s26 = int_to_ptr.vmem [resolvable:$true] %s147_s26 }
  0x12   : > { %s893_s24 = scalar_select %p718_p8, 1, 0 }
  0x13   : > { %p421_p9 = pneg %p718_p8  ;;  %s491_s4 = scalar_lea.hbm %s882_s1, 128 }
  0x14   : > { %p492_p12 = scmp.ne.s32.totalorder %s882_s1, %s491_s4  ;;  %p498_p5 = scmp.lt.u32.totalorder %s491_s4, %s882_s1 }
  0x15   : > { %p727_p11 = pnand %p421_p9, %p698_p1 }
  0x17   : > { %p493_p13 = pneg %p727_p11 }
  0x19   : > { %p494_p0 = pnand %p493_p13, %p492_p12 }
  0x1b   : > { %p495_p3 = pneg %p494_p0 }
  0x1d   : > { %p500_p7 = pnand %p498_p5, %p495_p3 }
  0x1f   : > { %503 = shalt.err (!%p500_p7)
}
  0x20   : > { %s504_s9 = scalar_lea.vmem %s148_s26, 128  ;;  %p512_p1 = scmp.lt.s32.totalorder %s148_s26, %s148_s26 }
  0x21   : > { %p505_p9 = scmp.ne.s32.totalorder %s148_s26, %s504_s9  ;;  %p513_p4 = scmp.lt.s32.totalorder %s504_s9, %s504_s9 }
  0x23   : > { %p507_p10 = pnand %p505_p9, %p493_p13  ;;  %p514_p8 = por %p513_p4, %p512_p1 }
  0x25   : > { %p508_p6 = pneg %p507_p10 }
  0x27   : > { %p515_p2 = pnand %p514_p8, %p508_p6 }
  0x29   : > { %518 = shalt.err (!%p515_p2)
}
  0x2a   : > { %s638_s10 = smov 64   ;;  %s639_s11 = smov 4  }
  0x2b   : > { %424 = dma.hbm_to_vmem [thread:$0]  (!%p727_p11), %s882_s1, 128, %s148_s26, [#allocation6], %s638_s10, %s638_s10, %s639_s11  }
  0x2c   : > { %p34_p1 = scmp.ge.s32.totalorder %s32_s28, 2  ;;  %s41_s25 = sadd.s32 1, %s623_s14 }
  0x2d   : > { %p48_p2 = scmp.ne.s32.totalorder %s623_s14, %s619_s13  ;;  %p49_p4 = scmp.eq.s32.totalorder %s635_s17, 0 }
  0x2e   : > { %s910_s28 = smov (%p34_p1, %s32_s28), 0  ;;  %p896_p8 = scmp.ne.s32.totalorder %s890_s21, 0 }
  0x2f   : > { %p754_p6 = por %p49_p4, %p48_p2  ;;  %s36_s27 = ssub.s32 %s631_s16, %s910_s28 }
  0x30   : > { %p760_p10 = por %p896_p8, %p48_p2  ;;  %p434_p12 = scmp.lt.s32.totalorder %s635_s17, 2 }
  0x31   : > { %p39_p11 = scmp.eq.s32.totalorder %s36_s27, 0  ;;  %s164_s26 = sand.u32 1, %s623_s14  }
  0x32   : > { %s392_s4 = sshll.u32 %s164_s26, 3  ;;  %s393_s6 = sshll.u32 %s631_s16, 7 }
  0x33   : > { %s769_s5 = scalar_select %p39_p11, %s623_s14, %s41_s25  }
  0x34   : > { %s775_s9 = scalar_lea.hbm %s881_s0, %s393_s6  ;;  %s168_s21 = scalar_lea.vmem [#allocation2], %s392_s4 }
  0x35   : > { %s176_s10 = sshll.u32 %s168_s21, 4  ;;  %p781_p13 = pnand %p434_p12, %p754_p6  ;;  %s777_s10 = int_to_ptr.vmem [resolvable:$true] %s176_s10 }
  0x36   : > { %s165_s18 = scalar_lea.sflag [#allocation3], %s164_s26  ;;  %s519_s19 = scalar_lea.hbm %s775_s9, 128 }
  0x37   : > { %p520_p0 = scmp.ne.s32.totalorder %s775_s9, %s519_s19  ;;  %p521_p3 = pneg %p781_p13 }
  0x38   : > { %s524_s4 = scalar_lea.hbm %s881_s0, 256  ;;  %p525_p9 = scmp.lt.u32.totalorder %s775_s9, %s881_s0 }
  0x39   : > { %p522_p5 = pnand %p521_p3, %p520_p0  ;;  %p526_p1 = scmp.lt.u32.totalorder %s524_s4, %s519_s19 }
  0x3a   : > { %p528_p4 = scmp.lt.u32.totalorder %s519_s19, %s775_s9 }
  0x3b   : > { %p523_p7 = pneg %p522_p5  ;;  %p527_p2 = por %p526_p1, %p525_p9 }
  0x3d   : > { %p529_p6 = por %p528_p4, %p527_p2 }
  0x3f   : > { %p530_p8 = pnand %p529_p6, %p523_p7 }
  0x41   : > { %533 = shalt.err (!%p530_p8)
}
  0x42   : > { %s534_s26 = scalar_lea.vmem %s777_s10, 128  ;;  %s640_s7 = smov [#allocation2]  }
  0x43   : > { %p535_p12 = scmp.ne.s32.totalorder %s777_s10, %s534_s26  ;;  %s539_s8 = sshll.u32 %s640_s7, 4  ;;  %s540_s8 = int_to_ptr.vmem [resolvable:$false] %s539_s8 }
  0x44   : > { %s541_s21 = scalar_lea.vmem %s540_s8, 256  ;;  %p542_p5 = scmp.lt.s32.totalorder %s777_s10, %s540_s8 }
  0x45   : > { %p537_p11 = pnand %p535_p12, %p521_p3  ;;  %p543_p9 = scmp.lt.s32.totalorder %s541_s21, %s534_s26 }
  0x47   : > { %p538_p0 = pneg %p537_p11  ;;  %p544_p1 = por %p543_p9, %p542_p5 }
  0x49   : > { %p545_p2 = pnand %p544_p1, %p538_p0 }
  0x4b   : > { %548 = shalt.err (!%p545_p2)
}
  0x4c   : > { %428 = dma.hbm_to_vmem [thread:$0]  (!%p781_p13), %s775_s9, 128, %s777_s10, %s165_s18  }
  0x4d   : > { %p899_p7 = scmp.ne.s32.totalorder %s893_s24, 0 }
  0x4e   : > { %s813_s19 = sand.u32 (!%p899_p7), 1, %s619_s13   ;;  %p900_p3 = scmp.ne.s32.totalorder (!%p899_p7), %s891_s22, 0 }
  0x4f   : > { %185 = sbr.rel (%p899_p7) target bundleno = 323 (0x143), region = 32  ;;  %s395_s25 = sshll.u32 (!%p899_p7), %s813_s19, 3 }
  0x50   : > { %s188_s27 = scalar_lea.sflag (!%p899_p7), [#allocation3], %s813_s19  ;;  %s191_s4 = scalar_lea.vmem (!%p899_p7), [#allocation2], %s395_s25 }
  0x56   : > { %602 = dma.done.wait (%p900_p3), %s188_s27, 128  }
  0x57   : > { %604 = vsyncadd (%p900_p3), %s188_s27, 4294967168  ;;  %p901_p4 = scmp.ne.s32.totalorder %s889_s20, 0 }
  0x59   : > { %606 = dma.done.wait (%p901_p4), [#allocation6], 128  }
  0x5a   : > { %608 = vsyncadd (%p901_p4), [#allocation6], 4294967168  ;;  %v641_v0 = vmov 0.0   ;;  %vm642_vm0 = vmmov 0   ;;  %v490_v1 = vld [vmem:[#allocation5] sm:$0xff]   ;;  %v219_v2 = vld [vmem:[%s191_s4] sm:$0xff] }
  0x5b   : > { %407 = vmatprep.subr.bf16.mxu0 %v641_v0  ;;  %409 = vmatprep.mubr.msk.bf16.mxu0 %vm642_vm0, %v641_v0  ;;  %v220_v3 = vpack.c.bf16 %v219_v2, %v219_v2  ;;  %vm236_vm1 = vcmask 130048   ;;  %v398_v4 = vld [vmem:[%s883_s2] ss:$0 sm:$0xff]  ;;  %s402_s9 = sshll.u32 %s627_s15, 7  ;;  %s217_s20 = scalar_lea.vmem [#allocation7], %s395_s25  ;;  %vm280_vm2 = vcmask 261120  }
  0x5c   : > { %408 = vmatpush3.bf16.msra.mxu0 %v490_v1  ;;  %s297_s10 = sshll.u32 %s217_s20, 4  ;;  %s832_s29 = scalar_lea.hbm %s884_s3, %s402_s9  ;;  %s834_s10 = int_to_ptr.vmem [resolvable:$true] %s297_s10 }
  0x5d   : > { %s283_s15 = scalar_lea.sflag [#allocation4], %s813_s19  ;;  %s549_s6 = scalar_lea.vmem %s834_s10, 128 }
  0x5e   : > { %p550_p13 = scmp.ne.s32.totalorder %s834_s10, %s549_s6  ;;  %s643_s26 = smov [#allocation7]  }
  0x5f   : > { %410 = vmatmul.mubr.msk.bf16.vlgmr.msra.gmra.mrb[0].mxu0 %vm236_vm1, %v220_v3  ;;  %s553_s7 = sshll.u32 %s643_s26, 4  ;;  %s554_s7 = int_to_ptr.vmem [resolvable:$false] %s553_s7 }
  0x60   : > { %p551_p6 = pnand %p550_p13, %p760_p10  ;;  %s555_s8 = scalar_lea.vmem %s554_s7, 256 }
  0x61   : > { %p556_p12 = scmp.lt.s32.totalorder %s834_s10, %s554_s7  ;;  %p557_p11 = scmp.lt.s32.totalorder %s555_s8, %s549_s6 }
  0x62   : > { %p552_p8 = pneg %p551_p6 }
  0x63   : > { %p558_p0 = por %p557_p11, %p556_p12 }
  0x65   : > { %p559_p5 = pnand %p558_p0, %p552_p8 }
 0x132   : > { %v274_v5 = vpop.f32.mrb[0].mxu0 }
 0x133   : > { %v275_v6 = vadd.f32 %v398_v4, %v274_v5  ;;  %v411_v7 = vpop.f32.mrb[1].mxu0 }
 0x134   : > { %v277_v8 = vpop.f32.mrb[2].mxu0 }
 0x135   : > { %v412_v9 = vpop.f32.mrb[3].mxu0  ;;  %281 = vst.msk [vmem:[%s217_s20] sm:$0xff] %vm280_vm2, %v275_v6 }
 0x136   : > { %562 = shalt.err (!%p559_p5)
}
 0x137   : > { %s563_s21 = scalar_lea.hbm %s832_s29, 128  ;;  %s567_s27 = scalar_lea.hbm %s884_s3, 256 }
 0x138   : > { %p564_p9 = scmp.ne.s32.totalorder %s832_s29, %s563_s21  ;;  %p568_p7 = scmp.lt.u32.totalorder %s832_s29, %s884_s3 }
 0x139   : > { %p569_p3 = scmp.lt.u32.totalorder %s567_s27, %s563_s21  ;;  %p571_p13 = scmp.lt.u32.totalorder %s563_s21, %s832_s29 }
 0x13a   : > { %p565_p1 = pnand %p564_p9, %p760_p10 }
 0x13b   : > { %p570_p4 = por %p569_p3, %p568_p7 }
 0x13c   : > { %p566_p2 = pneg %p565_p1 }
 0x13d   : > { %p572_p6 = por %p571_p13, %p570_p4 }
 0x13f   : > { %p573_p8 = pnand %p572_p6, %p566_p2 }
 0x141   : > { %576 = shalt.err (!%p573_p8)
}
 0x142   : > { %419 = dma.vmem_to_hbm [thread:$0]  (%p760_p10), %s834_s10, 128, %s832_s29, %s283_s15  }
 0x143 PF: > { %s309_s24 = sand.u32 1, %s615_s12   ;;  %p902_p12 = scmp.ne.s32.totalorder %s892_s23, 0 }
 0x144   : > { %p903_p11 = scmp.ge.s32.totalorder %s635_s17, 2  ;;  %s310_s9 = scalar_lea.sflag [#allocation4], %s309_s24 }
 0x146   : > { %p430_p0 = pnand %p903_p11, %p902_p12 }
 0x148   : > { %610 = dma.done.wait (!%p430_p0), %s310_s9, 128  }
 0x149   : > { %612 = vsyncadd (!%p430_p0), %s310_s9, 4294967168  ;;  %s20_s17 = sadd.s32 1, %s635_s17   ;;  %s904_s12 = smov %s619_s13 }
 0x14a   : > { %p17_p5 = scmp.ge.s32.totalorder %s20_s17, 4   ;;  %s905_s13 = smov %s623_s14 }
 0x14b   : > { %s906_s14 = smov %s769_s5  ;;  %s907_s15 = smov %s631_s16 }
 0x14c   : > { %s908_s16 = smov %s910_s28  ;;  %19 = sbr.rel (!%p17_p5) target bundleno = 7 (0x7), region = 81 }
 0x153   :  { %315 = vsyncpa [#allocation3], 1 }
 0x154   :  { %317 = vsyncpa [#allocation3 + $0x1], 1 }
 0x155   :  { %318 = vsyncpa [#allocation6], 1 }
 0x156   :  { %319 = vsyncpa [#allocation4], 1 }
 0x157   :  { %321 = vsyncpa [#allocation4 + $0x1], 1 }

</bundles_post_ra>
